<compile_context>
chip_gen: v6e
topology: v6e:2x2x1
jax: 0.10.0
libtpu: 0.0.40
codegen_flags: <defaults>
</compile_context>

<pallas_src>
import jax
import jax.numpy as jnp
from jax.experimental import pallas as pl
from jax.experimental.pallas import tpu as pltpu


def _round_up(n, m):
    return ((n + m - 1) // m) * m


def _row_align(*dtypes):
    # Sublane alignment for the batch (second-to-last) dim of the tiles.
    min_item = min(jnp.dtype(d).itemsize for d in dtypes)
    return {4: 8, 2: 16, 1: 32}.get(min_item, 8)


def _vmem_ceiling_bytes():
    # ~75% of physical VMEM: ~48 MiB on v7x (64 MiB), ~96 MiB on v5e/v6e
    # (128 MiB); leaves headroom for Mosaic internal scratch.
    try:
        cap = int(pltpu.get_tpu_info().vmem_capacity_bytes)
    except Exception:
        cap = 64 << 20
    return max(32 << 20, (cap * 3) // 4)


def _encoder_kernel(x_ref, w1_ref, b1_ref, w2_ref, b2_ref, o_ref):
    # Fused MLP tile: matmul -> bias -> ReLU -> matmul -> bias, f32 accumulate.
    x = x_ref[...].astype(w1_ref.dtype)          # cast in VMEM, no extra HBM pass
    h = jnp.dot(x, w1_ref[...], preferred_element_type=jnp.float32)
    h = jnp.maximum(h + b1_ref[...], 0.0)        # bias + ReLU in f32
    y = jnp.dot(h.astype(w2_ref.dtype), w2_ref[...],
                preferred_element_type=jnp.float32)
    o_ref[...] = (y + b2_ref[...]).astype(o_ref.dtype)


def encoder_forward(x, w1, b1, w2, b2, *, block_batch=None,
                    compute_dtype=jnp.bfloat16, out_dtype=None):
    """x: (B, input_dim); w1: (input_dim, hidden); b1: (hidden,);
       w2: (hidden, latent_dim); b2: (latent_dim,). Returns (B, latent_dim)."""
    B, input_dim = x.shape
    hidden = w1.shape[1]
    latent_dim = w2.shape[1]
    assert w1.shape[0] == input_dim and w2.shape[0] == hidden
    assert b1.shape == (hidden,) and b2.shape == (latent_dim,)

    if out_dtype is None:
        out_dtype = x.dtype
    compute_dtype = jnp.dtype(compute_dtype)
    out_dtype = jnp.dtype(out_dtype)

    # Weights: cast once (small, resident across all grid steps); biases in f32.
    w1c = w1.astype(compute_dtype)
    w2c = w2.astype(compute_dtype)
    b1_2d = b1.astype(jnp.float32).reshape(1, hidden)
    b2_2d = b2.astype(jnp.float32).reshape(1, latent_dim)

    align = _row_align(x.dtype, compute_dtype, out_dtype)

    # --- batch tiling --------------------------------------------------------
    if block_batch is None:
        if B <= 1024:
            # One aligned tile: no pipeline prologue/epilogue for small batches.
            block_batch = _round_up(B, align)
        else:
            # Big tiles amortize the ~0.35us/step overhead, but keep >= 4 grid
            # steps so v7x megacore has >= 2 steps per TensorCore to pipeline.
            block_batch = min(4096, _round_up(pl.cdiv(B, 4), align))
        # Keep double-buffered x/out tiles within a modest VMEM budget.
        bytes_per_row = 2 * (input_dim * x.dtype.itemsize
                             + latent_dim * out_dtype.itemsize)
        max_rows = max(align, ((24 << 20) // max(bytes_per_row, 1)) // align * align)
        block_batch = min(block_batch, max_rows)
    block_batch = _round_up(block_batch, align)

    # Ragged batches: no wrapper-side pad. Pallas masks the edge block; each
    # output row depends only on its own input row, so garbage edge rows never
    # reach a valid output row, and OOB writes are dropped.
    grid = (pl.cdiv(B, block_batch),)

    # --- VMEM budget ----------------------------------------------------------
    w_bytes = compute_dtype.itemsize
    weights_bytes = (input_dim * hidden + hidden * latent_dim) * w_bytes
    # Constant-index weight blocks: single-buffer them when they are large so
    # the saved VMEM can go to bigger batch tiles (matters on v7x / big input_dim).
    single_buffer_weights = weights_bytes > (2 << 20)
    weight_bufs = 1 if single_buffer_weights else 2

    vmem_est = (2 * block_batch * input_dim * x.dtype.itemsize
                + 2 * block_batch * latent_dim * out_dtype.itemsize
                + weight_bufs * weights_bytes
                + weight_bufs * (hidden + latent_dim) * 4
                + (4 << 20))                                  # scratch / headroom
    vmem_limit = int(min(_vmem_ceiling_bytes(), max(vmem_est, 32 << 20)))

    cost = pl.CostEstimate(
        flops=2 * B * input_dim * hidden + 2 * B * hidden * latent_dim,
        transcendentals=0,
        bytes_accessed=(B * input_dim * x.dtype.itemsize
                        + B * latent_dim * out_dtype.itemsize
                        + weights_bytes
                        + (hidden + latent_dim) * 4),
    )

    def _const_spec(shape):
        idx = lambda i: (0,) * len(shape)
        if single_buffer_weights:
            return pl.BlockSpec(shape, idx, pipeline_mode=pl.Buffered(1))
        return pl.BlockSpec(shape, idx)

    out = pl.pallas_call(
        _encoder_kernel,
        out_shape=jax.ShapeDtypeStruct((B, latent_dim), out_dtype),
        grid_spec=pltpu.PrefetchScalarGridSpec(
            num_scalar_prefetch=0,
            grid=grid,
            in_specs=[
                # batch tile of the input (pipelined along the grid)
                pl.BlockSpec((block_batch, input_dim), lambda i: (i, 0)),
                # weights/biases: constant-index blocks, resident in VMEM
                _const_spec((input_dim, hidden)),
                _const_spec((1, hidden)),
                _const_spec((hidden, latent_dim)),
                _const_spec((1, latent_dim)),
            ],
            out_specs=pl.BlockSpec((block_batch, latent_dim), lambda i: (i, 0)),
        ),
        compiler_params=pltpu.CompilerParams(
            dimension_semantics=("parallel",),
            vmem_limit_bytes=vmem_limit,
        ),
        cost_estimate=cost,
    )(x, w1c, b1_2d, w2c, b2_2d)

    return out


def init_encoder_params(key, input_dim, latent_dim, hidden=128):
    """Deterministic synthetic params mirroring nn.Linear shapes (stored transposed)."""
    k1, k2, k3, k4 = jax.random.split(key, 4)
    lim1 = 1.0 / jnp.sqrt(jnp.float32(input_dim))
    lim2 = 1.0 / jnp.sqrt(jnp.float32(hidden))
    w1 = jax.random.uniform(k1, (input_dim, hidden), jnp.float32, -lim1, lim1)
    b1 = jax.random.uniform(k2, (hidden,), jnp.float32, -lim1, lim1)
    w2 = jax.random.uniform(k3, (hidden, latent_dim), jnp.float32, -lim2, lim2)
    b2 = jax.random.uniform(k4, (latent_dim,), jnp.float32, -lim2, lim2)
    return w1, b1, w2, b2


if __name__ == "__main__":
    input_dim, latent_dim, hidden = 32, 16, 128

    key = jax.random.PRNGKey(0)
    kx, kp, kx2 = jax.random.split(key, 3)
    w1, b1, w2, b2 = init_encoder_params(kp, input_dim, latent_dim, hidden)

    def reference(xv):
        return jnp.maximum(xv @ w1 + b1, 0.0) @ w2 + b2

    # 1) Default bf16-MXU path: batch 512 -> one lane-aligned tile, f32 output.
    x = jax.random.normal(kx, (512, input_dim), jnp.float32)
    out = jax.block_until_ready(encoder_forward(x, w1, b1, w2, b2))
    ref = reference(x)
    assert out.shape == (512, latent_dim)
    assert bool(jnp.all(jnp.isfinite(out)))
    # bf16 operands vs f32 reference: loosened tolerance per activation scale.
    assert jnp.allclose(out, ref, atol=5e-2, rtol=5e-2), \
        f"bf16 path max err {float(jnp.max(jnp.abs(out - ref)))}"

    # 2) f32 compute path + ragged batch (19 rows): exercises the masked edge block.
    x2 = jax.random.normal(kx2, (19, input_dim), jnp.float32)
    out2 = jax.block_until_ready(
        encoder_forward(x2, w1, b1, w2, b2, compute_dtype=jnp.float32))
    ref2 = reference(x2)
    assert out2.shape == (19, latent_dim)
    assert jnp.allclose(out2, ref2, atol=3e-2, rtol=3e-2), \
        f"f32 path max err {float(jnp.max(jnp.abs(out2 - ref2)))}"

    print("KERNEL_OK")
</pallas_src>

<mosaic_0001>
module attributes {stable_mosaic.version = 11 : i64} {
  func.func @_encoder_kernel(%arg0: i32, %arg1: memref<512x32xf32, #tpu.memory_space<vmem>>, %arg2: memref<32x128xbf16, #tpu.memory_space<vmem>>, %arg3: memref<1x128xf32, #tpu.memory_space<vmem>>, %arg4: memref<128x16xbf16, #tpu.memory_space<vmem>>, %arg5: memref<1x16xf32, #tpu.memory_space<vmem>>, %arg6: memref<512x16xf32, #tpu.memory_space<vmem>>) attributes {dimension_semantics = [#tpu.dimension_semantics<parallel>], iteration_bounds = array<i64: 1>, scalar_prefetch = 0 : i64, scratch_operands = 0 : i64, tpu.core_type = #tpu.core_type<tc>, window_params = [{transform_indices = @transform_0, window_bounds = array<i64: 512, 32>}, {pipeline_mode = #tpu.pipeline_mode<synchronous>, transform_indices = @transform_1, window_bounds = array<i64: 32, 128>}, {pipeline_mode = #tpu.pipeline_mode<synchronous>, transform_indices = @transform_2, window_bounds = array<i64: 1, 128>}, {pipeline_mode = #tpu.pipeline_mode<synchronous>, transform_indices = @transform_3, window_bounds = array<i64: 128, 16>}, {pipeline_mode = #tpu.pipeline_mode<synchronous>, transform_indices = @transform_4, window_bounds = array<i64: 1, 16>}, {transform_indices = @transform_5, window_bounds = array<i64: 512, 16>}]} {
    %c0 = arith.constant 0 : index
    %c0_0 = arith.constant 0 : index
    %0 = vector.load %arg1[%c0, %c0_0] : memref<512x32xf32, #tpu.memory_space<vmem>>, vector<512x32xf32>
    %1 = arith.truncf %0 : vector<512x32xf32> to vector<512x32xbf16>
    %c0_1 = arith.constant 0 : index
    %c0_2 = arith.constant 0 : index
    %2 = vector.load %arg2[%c0_1, %c0_2] : memref<32x128xbf16, #tpu.memory_space<vmem>>, vector<32x128xbf16>
    %cst = arith.constant dense<0.000000e+00> : vector<512x128xf32>
    %3 = tpu.matmul %1, %2, %cst {dimension_numbers = #tpu.dot_dimension_numbers<[1], [0], [0], [1], [0, 0, 1, 1], [], []>} : vector<512x32xbf16>, vector<32x128xbf16>, vector<512x128xf32> -> vector<512x128xf32>
    %c0_3 = arith.constant 0 : index
    %c0_4 = arith.constant 0 : index
    %4 = vector.load %arg3[%c0_3, %c0_4] : memref<1x128xf32, #tpu.memory_space<vmem>>, vector<1x128xf32>
    %5 = vector.broadcast %4 : vector<1x128xf32> to vector<512x128xf32>
    %6 = arith.addf %3, %5 : vector<512x128xf32>
    %cst_5 = arith.constant 0.000000e+00 : f32
    %7 = vector.broadcast %cst_5 : f32 to vector<512x128xf32>
    %8 = arith.maximumf %6, %7 : vector<512x128xf32>
    %9 = arith.truncf %8 : vector<512x128xf32> to vector<512x128xbf16>
    %c0_6 = arith.constant 0 : index
    %c0_7 = arith.constant 0 : index
    %10 = vector.load %arg4[%c0_6, %c0_7] : memref<128x16xbf16, #tpu.memory_space<vmem>>, vector<128x16xbf16>
    %cst_8 = arith.constant dense<0.000000e+00> : vector<512x16xf32>
    %11 = tpu.matmul %9, %10, %cst_8 {dimension_numbers = #tpu.dot_dimension_numbers<[1], [0], [0], [1], [0, 0, 1, 1], [], []>} : vector<512x128xbf16>, vector<128x16xbf16>, vector<512x16xf32> -> vector<512x16xf32>
    %c0_9 = arith.constant 0 : index
    %c0_10 = arith.constant 0 : index
    %12 = vector.load %arg5[%c0_9, %c0_10] : memref<1x16xf32, #tpu.memory_space<vmem>>, vector<1x16xf32>
    %13 = vector.broadcast %12 : vector<1x16xf32> to vector<512x16xf32>
    %14 = arith.addf %11, %13 : vector<512x16xf32>
    %c0_11 = arith.constant 0 : index
    %c0_12 = arith.constant 0 : index
    %15 = vector.load %arg6[%c0_11, %c0_12] : memref<512x16xf32, #tpu.memory_space<vmem>>, vector<512x16xf32>
    tpu.vector_store %arg6[%c0_11, %c0_12], %14 {strides = array<i32>} : memref<512x16xf32, #tpu.memory_space<vmem>>, vector<512x16xf32>,
    return
  }
  func.func @transform_0(%arg0: i32) -> (i32, i32) {
    %c0_i32 = arith.constant 0 : i32
    %c0_i32_0 = arith.constant 0 : i32
    return %arg0, %c0_i32 : i32, i32
  }
  func.func @transform_1(%arg0: i32) -> (i32, i32) {
    %c0_i32 = arith.constant 0 : i32
    %c0_i32_0 = arith.constant 0 : i32
    %c0_i32_1 = arith.constant 0 : i32
    return %c0_i32, %c0_i32_0 : i32, i32
  }
  func.func @transform_2(%arg0: i32) -> (i32, i32) {
    %c0_i32 = arith.constant 0 : i32
    %c0_i32_0 = arith.constant 0 : i32
    %c0_i32_1 = arith.constant 0 : i32
    return %c0_i32, %c0_i32_0 : i32, i32
  }
  func.func @transform_3(%arg0: i32) -> (i32, i32) {
    %c0_i32 = arith.constant 0 : i32
    %c0_i32_0 = arith.constant 0 : i32
    %c0_i32_1 = arith.constant 0 : i32
    return %c0_i32, %c0_i32_0 : i32, i32
  }
  func.func @transform_4(%arg0: i32) -> (i32, i32) {
    %c0_i32 = arith.constant 0 : i32
    %c0_i32_0 = arith.constant 0 : i32
    %c0_i32_1 = arith.constant 0 : i32
    return %c0_i32, %c0_i32_0 : i32, i32
  }
  func.func @transform_5(%arg0: i32) -> (i32, i32) {
    %c0_i32 = arith.constant 0 : i32
    %c0_i32_0 = arith.constant 0 : i32
    return %arg0, %c0_i32 : i32, i32
  }
}

</mosaic_0001>

<bundles_post_ra>
// kernel: tpu_custom_call.1
= control target key start
LH: loop header
LB: loop body
LE: loop exit
PB: predicated region body
PF: predicated region fallthrough
CT: control target
= control target key end

     0   :  { %vm140_vm0 = vcmask 261120   ;;  %vm982_vm1 = vcmask 130048   ;;  %s2021_s1 = inlined_call_operand.vmem [shape: bf16[32,128], index: 1, kind: input, shape index: {}]   ;;  %s2022_s0 = inlined_call_operand.vmem [shape: f32[512,32], index: 0, kind: input, shape index: {}]   ;;  %s2023_s3 = inlined_call_operand.vmem [shape: bf16[128,16], index: 3, kind: input, shape index: {}]   ;;  %s2024_s2 = inlined_call_operand.vmem [shape: f32[1,128], index: 2, kind: input, shape index: {}]   ;;  %s2025_s4 = inlined_call_operand.vmem [shape: f32[1,16], index: 4, kind: input, shape index: {}]   ;;  %s2026_s5 = inlined_call_operand.vmem [shape: f32[512,16], index: 5, kind: output, shape index: {}]  }
   0x1   :  { %v1333_v0 = vld [vmem:[%s2021_s1 + $0x8] sm:$0xff]   ;;  %v1334_v1 = vld [vmem:[%s2021_s1] sm:$0xff]   ;;  %v23_v5 = vld [vmem:[%s2022_s0 + $0x10] sm:$0xff] }
   0x2   :  { %1169 = vmatprep.subr.bf16.mxu0 %v1333_v0  ;;  %v21_v2 = vld [vmem:[%s2022_s0] sm:$0xff]  ;;  %v22_v3 = vld [vmem:[%s2022_s0 + $0x8] sm:$0xff]  ;;  %v24_v6 = vld [vmem:[%s2022_s0 + $0x18] sm:$0xff] }
   0x3   :  { %1170 = vmatpush3.bf16.msra.mxu0 %v1333_v0  ;;  %v85_v4 = vpack.c.bf16 %v22_v3, %v21_v2  ;;  %v25_v7 = vld [vmem:[%s2022_s0 + $0x20] sm:$0xff]  ;;  %v26_v8 = vld [vmem:[%s2022_s0 + $0x28] sm:$0xff]  ;;  %v86_v9 = vpack.c.bf16 %v24_v6, %v23_v5  ;;  %v27_v11 = vld [vmem:[%s2022_s0 + $0x30] sm:$0xff] }
   0x4   :  { %1171 = vmatprep.subr.bf16.mxu0 %v1334_v1  ;;  %v87_v10 = vpack.c.bf16 %v26_v8, %v25_v7  ;;  %v28_v12 = vld [vmem:[%s2022_s0 + $0x38] sm:$0xff]  ;;  %v29_v13 = vld [vmem:[%s2022_s0 + $0x40] sm:$0xff]  ;;  %v30_v14 = vld [vmem:[%s2022_s0 + $0x48] sm:$0xff] }
   0x5   :  { %1173 = vmatprep.mubr.msk.bf16.mxu0 %vm140_vm0, %v85_v4  ;;  %v88_v15 = vpack.c.bf16 %v28_v12, %v27_v11  ;;  %v89_v16 = vpack.c.bf16 %v30_v14, %v29_v13  ;;  %v31_v17 = vld [vmem:[%s2022_s0 + $0x50] sm:$0xff]  ;;  %v32_v18 = vld [vmem:[%s2022_s0 + $0x58] sm:$0xff]  ;;  %v33_v19 = vld [vmem:[%s2022_s0 + $0x60] sm:$0xff] }
   0x6   :  { %v34_v20 = vld [vmem:[%s2022_s0 + $0x68] sm:$0xff]  ;;  %v90_v21 = vpack.c.bf16 %v32_v18, %v31_v17  ;;  %v1335_v23 = vld [vmem:[%s2023_s3 + $0x38] sm:$0xff]   ;;  %v35_v24 = vld [vmem:[%s2022_s0 + $0x70] sm:$0xff] }
   0x7   :  { %1172 = vmatpush3.bf16.msra.mxu0 %v1334_v1  ;;  %v91_v22 = vpack.c.bf16 %v34_v20, %v33_v19  ;;  %v36_v25 = vld [vmem:[%s2022_s0 + $0x78] sm:$0xff]  ;;  %v1336_v26 = vld [vmem:[%s2023_s3 + $0x30] sm:$0xff]   ;;  %v37_v27 = vld [vmem:[%s2022_s0 + $0x80] sm:$0xff]  ;;  %1317 = vmatprep.subr.bf16.mxu1 %v1335_v23 }
   0x8   :  { %1237 = vmatprep.subr.bf16.mxu0 %v1335_v23  ;;  %v38_v28 = vld [vmem:[%s2022_s0 + $0x88] sm:$0xff]  ;;  %1325 = vmatpush3.bf16.msra.mxu1 %v1335_v23  ;;  %v92_v30 = vpack.c.bf16 %v36_v25, %v35_v24  ;;  %v1338_v32 = vld [vmem:[%s2023_s3 + $0x20] sm:$0xff]   ;;  %v39_v33 = vld [vmem:[%s2022_s0 + $0x90] sm:$0xff] }
   0x9   :  { %v1337_v29 = vld [vmem:[%s2023_s3 + $0x28] sm:$0xff]   ;;  %1318 = vmatprep.subr.bf16.mxu1 %v1336_v26  ;;  %v93_v31 = vpack.c.bf16 %v38_v28, %v37_v27  ;;  %v40_v34 = vld [vmem:[%s2022_s0 + $0x98] sm:$0xff]  ;;  %v41_v35 = vld [vmem:[%s2022_s0 + $0xa0] sm:$0xff] }
   0xa   :  { %1174 = vmatmul.mubr.msk.bf16.vlgmr.msra.gmra.mxu0 %vm140_vm0, %v86_v9  ;;  %v42_v36 = vld [vmem:[%s2022_s0 + $0xa8] sm:$0xff]  ;;  %v1339_v37 = vld [vmem:[%s2023_s3 + $0x18] sm:$0xff]   ;;  %v94_v38 = vpack.c.bf16 %v40_v34, %v39_v33  ;;  %v43_v40 = vld [vmem:[%s2022_s0 + $0xb0] sm:$0xff] }
   0xb   :  { %1177 = vmatprep.mubr.msk.bf16.mxu0 %vm140_vm0, %v87_v10  ;;  %1238 = vmatpush3.bf16.msra.mxu0 %v1335_v23  ;;  %v95_v39 = vpack.c.bf16 %v42_v36, %v41_v35  ;;  %v44_v41 = vld [vmem:[%s2022_s0 + $0xb8] sm:$0xff]  ;;  %v45_v42 = vld [vmem:[%s2022_s0 + $0xc0] sm:$0xff]  ;;  %v46_v43 = vld [vmem:[%s2022_s0 + $0xc8] sm:$0xff] }
   0xc   :  { %1239 = vmatprep.subr.bf16.mxu0 %v1336_v26  ;;  %1326 = vmatpush3.bf16.msra.mxu1 %v1336_v26  ;;  %v96_v44 = vpack.c.bf16 %v44_v41, %v43_v40  ;;  %v97_v45 = vpack.c.bf16 %v46_v43, %v45_v42  ;;  %v47_v46 = vld [vmem:[%s2022_s0 + $0xd0] sm:$0xff]  ;;  %v48_v47 = vld [vmem:[%s2022_s0 + $0xd8] sm:$0xff]  ;;  %v49_v48 = vld [vmem:[%s2022_s0 + $0xe0] sm:$0xff] }
   0xd   :  { %1319 = vmatprep.subr.bf16.mxu1 %v1337_v29  ;;  %v50_v49 = vld [vmem:[%s2022_s0 + $0xe8] sm:$0xff]  ;;  %v98_v50 = vpack.c.bf16 %v48_v47, %v47_v46  ;;  %v51_v52 = vld [vmem:[%s2022_s0 + $0xf0] sm:$0xff]  ;;  %v52_v53 = vld [vmem:[%s2022_s0 + $0xf8] sm:$0xff] }
   0xe   :  { %v99_v51 = vpack.c.bf16 %v50_v49, %v49_v48  ;;  %v53_v54 = vld [vmem:[%s2022_s0 + $0x100] sm:$0xff]  ;;  %v54_v55 = vld [vmem:[%s2022_s0 + $0x108] sm:$0xff]  ;;  %v100_v56 = vpack.c.bf16 %v52_v53, %v51_v52  ;;  %v55_v58 = vld [vmem:[%s2022_s0 + $0x110] sm:$0xff] }
   0xf   :  { %1240 = vmatpush3.bf16.msra.mxu0 %v1336_v26  ;;  %v101_v57 = vpack.c.bf16 %v54_v55, %v53_v54  ;;  %v56_v59 = vld [vmem:[%s2022_s0 + $0x118] sm:$0xff]  ;;  %v57_v60 = vld [vmem:[%s2022_s0 + $0x120] sm:$0xff]  ;;  %v58_v61 = vld [vmem:[%s2022_s0 + $0x128] sm:$0xff] }
  0x10   :  { %1241 = vmatprep.subr.bf16.mxu0 %v1337_v29  ;;  %1327 = vmatpush3.bf16.msra.mxu1 %v1337_v29  ;;  %v102_v62 = vpack.c.bf16 %v56_v59, %v55_v58  ;;  %v103_v63 = vpack.c.bf16 %v58_v61, %v57_v60  ;;  %v1340_v0 = vld [vmem:[%s2023_s3 + $0x10] sm:$0xff]   ;;  %v60_v2 = vld [vmem:[%s2022_s0 + $0x138] sm:$0xff]  ;;  %v61_v3 = vld [vmem:[%s2022_s0 + $0x140] sm:$0xff] }
  0x11   :  { %1320 = vmatprep.subr.bf16.mxu1 %v1338_v32  ;;  %v59_v1 = vld [vmem:[%s2022_s0 + $0x130] sm:$0xff]  ;;  %v62_v4 = vld [vmem:[%s2022_s0 + $0x148] sm:$0xff]  ;;  %v1342_v8 = vld [vmem:[%s2023_s3] sm:$0xff]  }
  0x12   :  { %1178 = vmatmul.mubr.msk.bf16.gmra.mxu0 %vm140_vm0, %v88_v15  ;;  %v104_v5 = vpack.c.bf16 %v60_v2, %v59_v1  ;;  %v1341_v6 = vld [vmem:[%s2023_s3 + $0x8] sm:$0xff]   ;;  %v105_v7 = vpack.c.bf16 %v62_v4, %v61_v3  ;;  %v63_v9 = vld [vmem:[%s2022_s0 + $0x150] sm:$0xff]  ;;  %v64_v10 = vld [vmem:[%s2022_s0 + $0x158] sm:$0xff] }
  0x13   :  { %1181 = vmatprep.mubr.msk.bf16.mxu0 %vm140_vm0, %v89_v16  ;;  %1242 = vmatpush3.bf16.msra.mxu0 %v1337_v29  ;;  %v65_v11 = vld [vmem:[%s2022_s0 + $0x160] sm:$0xff]  ;;  %v66_v12 = vld [vmem:[%s2022_s0 + $0x168] sm:$0xff]  ;;  %v106_v13 = vpack.c.bf16 %v64_v10, %v63_v9  ;;  %v67_v15 = vld [vmem:[%s2022_s0 + $0x170] sm:$0xff] }
  0x14   :  { %1243 = vmatprep.subr.bf16.mxu0 %v1338_v32  ;;  %1328 = vmatpush3.bf16.msra.mxu1 %v1338_v32  ;;  %v107_v14 = vpack.c.bf16 %v66_v12, %v65_v11  ;;  %v68_v16 = vld [vmem:[%s2022_s0 + $0x178] sm:$0xff]  ;;  %v69_v17 = vld [vmem:[%s2022_s0 + $0x180] sm:$0xff]  ;;  %v70_v18 = vld [vmem:[%s2022_s0 + $0x188] sm:$0xff] }
  0x15   :  { %1321 = vmatprep.subr.bf16.mxu1 %v1339_v37  ;;  %v108_v19 = vpack.c.bf16 %v68_v16, %v67_v15  ;;  %v109_v20 = vpack.c.bf16 %v70_v18, %v69_v17  ;;  %v73_v23 = vld [vmem:[%s2022_s0 + $0x1a0] sm:$0xff]  ;;  %v74_v24 = vld [vmem:[%s2022_s0 + $0x1a8] sm:$0xff]  ;;  %v75_v27 = vld [vmem:[%s2022_s0 + $0x1b0] sm:$0xff] }
  0x16   :  { %v111_v26 = vpack.c.bf16 %v74_v24, %v73_v23  ;;  %v76_v28 = vld [vmem:[%s2022_s0 + $0x1b8] sm:$0xff]  ;;  %v77_v29 = vld [vmem:[%s2022_s0 + $0x1c0] sm:$0xff]  ;;  %v79_v33 = vld [vmem:[%s2022_s0 + $0x1d0] sm:$0xff] }
  0x17   :  { %1244 = vmatpush3.bf16.msra.mxu0 %v1338_v32  ;;  %v80_v34 = vld [vmem:[%s2022_s0 + $0x1d8] sm:$0xff]  ;;  %v81_v35 = vld [vmem:[%s2022_s0 + $0x1e0] sm:$0xff]  ;;  %v82_v36 = vld [vmem:[%s2022_s0 + $0x1e8] sm:$0xff] }
  0x18   :  { %1245 = vmatprep.subr.bf16.mxu0 %v1339_v37  ;;  %1329 = vmatpush3.bf16.msra.mxu1 %v1339_v37  ;;  %v84_v40 = vld [vmem:[%s2022_s0 + $0x1f8] sm:$0xff] }
  0x19   :  { %1322 = vmatprep.subr.bf16.mxu1 %v1340_v0 }
  0x1a   :  { %1182 = vmatmul.mubr.msk.bf16.gmra.mxu0 %vm140_vm0, %v90_v21  ;;  %v71_v21 = vld [vmem:[%s2022_s0 + $0x190] sm:$0xff] }
  0x1b   :  { %1185 = vmatprep.mubr.msk.bf16.mxu0 %vm140_vm0, %v91_v22  ;;  %1246 = vmatpush3.bf16.msra.mxu0 %v1339_v37  ;;  %v72_v22 = vld [vmem:[%s2022_s0 + $0x198] sm:$0xff]  ;;  %v114_v37 = vpack.c.bf16 %v80_v34, %v79_v33 }
  0x1c   :  { %1247 = vmatprep.subr.bf16.mxu0 %v1340_v0  ;;  %1330 = vmatpush3.bf16.msra.mxu1 %v1340_v0  ;;  %v110_v25 = vpack.c.bf16 %v72_v22, %v71_v21 }
  0x1d   :  { %1323 = vmatprep.subr.bf16.mxu1 %v1341_v6 }
  0x1f   :  { %1248 = vmatpush3.bf16.msra.mxu0 %v1340_v0 }
  0x20   :  { %1249 = vmatprep.subr.bf16.mxu0 %v1341_v6  ;;  %1331 = vmatpush3.bf16.msra.mxu1 %v1341_v6 }
  0x21   :  { %1324 = vmatprep.subr.bf16.mxu1 %v1342_v8 }
  0x22   :  { %1186 = vmatmul.mubr.msk.bf16.gmra.mxu0 %vm140_vm0, %v92_v30  ;;  %v78_v30 = vld [vmem:[%s2022_s0 + $0x1c8] sm:$0xff] }
  0x23   :  { %1189 = vmatprep.mubr.msk.bf16.mxu0 %vm140_vm0, %v93_v31  ;;  %1250 = vmatpush3.bf16.msra.mxu0 %v1341_v6  ;;  %v112_v31 = vpack.c.bf16 %v76_v28, %v75_v27  ;;  %v113_v32 = vpack.c.bf16 %v78_v30, %v77_v29 }
  0x24   :  { %1251 = vmatprep.subr.bf16.mxu0 %v1342_v8  ;;  %1332 = vmatpush3.bf16.msra.mxu1 %v1342_v8 }
  0x27   :  { %1252 = vmatpush3.bf16.msra.mxu0 %v1342_v8 }
  0x2a   :  { %1190 = vmatmul.mubr.msk.bf16.gmra.mxu0 %vm140_vm0, %v94_v38  ;;  %v115_v38 = vpack.c.bf16 %v82_v36, %v81_v35 }
  0x2b   :  { %1193 = vmatprep.mubr.msk.bf16.mxu0 %vm140_vm0, %v95_v39  ;;  %v83_v39 = vld [vmem:[%s2022_s0 + $0x1f0] sm:$0xff] }
  0x2c   :  { %v116_v41 = vpack.c.bf16 %v84_v40, %v83_v39 }
  0x32   :  { %1194 = vmatmul.mubr.msk.bf16.gmra.mxu0 %vm140_vm0, %v96_v44  ;;  %v1630_v44 = vld [vmem:[%s2024_s2] ss:$0 sm:$0xff] }
  0x33   :  { %1197 = vmatprep.mubr.msk.bf16.mxu0 %vm140_vm0, %v97_v45 }
  0x3a   :  { %1198 = vmatmul.mubr.msk.bf16.gmra.mxu0 %vm140_vm0, %v98_v50 }
  0x3b   :  { %1201 = vmatprep.mubr.msk.bf16.mxu0 %vm140_vm0, %v99_v51 }
  0x42   :  { %1202 = vmatmul.mubr.msk.bf16.gmra.mxu0 %vm140_vm0, %v100_v56 }
  0x43   :  { %1205 = vmatprep.mubr.msk.bf16.mxu0 %vm140_vm0, %v101_v57 }
  0x4a   :  { %1206 = vmatmul.mubr.msk.bf16.gmra.mxu0 %vm140_vm0, %v102_v62 }
  0x4b   :  { %1209 = vmatprep.mubr.msk.bf16.mxu0 %vm140_vm0, %v103_v63 }
  0x52   :  { %1210 = vmatmul.mubr.msk.bf16.gmra.mxu0 %vm140_vm0, %v104_v5 }
  0x53   :  { %1213 = vmatprep.mubr.msk.bf16.mxu0 %vm140_vm0, %v105_v7 }
  0x5a   :  { %1214 = vmatmul.mubr.msk.bf16.gmra.mxu0 %vm140_vm0, %v106_v13 }
  0x5b   :  { %1217 = vmatprep.mubr.msk.bf16.mxu0 %vm140_vm0, %v107_v14 }
  0x62   :  { %1218 = vmatmul.mubr.msk.bf16.gmra.mxu0 %vm140_vm0, %v108_v19 }
  0x63   :  { %1221 = vmatprep.mubr.msk.bf16.mxu0 %vm140_vm0, %v109_v20 }
  0x6a   :  { %1222 = vmatmul.mubr.msk.bf16.gmra.mxu0 %vm140_vm0, %v110_v25 }
  0x6b   :  { %1225 = vmatprep.mubr.msk.bf16.mxu0 %vm140_vm0, %v111_v26 }
  0x72   :  { %1226 = vmatmul.mubr.msk.bf16.gmra.mxu0 %vm140_vm0, %v112_v31 }
  0x73   :  { %1229 = vmatprep.mubr.msk.bf16.mxu0 %vm140_vm0, %v113_v32 }
  0x7a   :  { %1230 = vmatmul.mubr.msk.bf16.gmra.mxu0 %vm140_vm0, %v114_v37 }
  0x7b   :  { %1233 = vmatprep.mubr.msk.bf16.mxu0 %vm140_vm0, %v115_v38 }
  0x82   :  { %1234 = vmatmul.mubr.msk.bf16.gmra.mxu0 %vm140_vm0, %v116_v41 }
  0xca   :  { %v1175_v42 = vpop.f32.mrf.mxu0 }
  0xcb   :  { %v280_v48 = vadd.f32 %v1175_v42, %v1630_v44 }
  0xcc   :  { %v271_v43 = vpop.f32.mrf.mxu0 }
  0xcd   :  { %v272_v46 = vadd.f32 %v1630_v44, %v271_v43  ;;  %v528_v55 = vmax.f32 %v280_v48, 0.0 }
  0xce   :  { %v1176_v45 = vpop.f32.mrf.mxu0 }
  0xcf   :  { %v283_v47 = vadd.f32 %v1176_v45, %v1630_v44  ;;  %v526_v53 = vmax.f32 %v272_v46, 0.0 }
  0xd0   :  { %v274_v49 = vpop.f32.mrf.mxu0 }
  0xd1   :  { %v275_v50 = vadd.f32 %v1630_v44, %v274_v49  ;;  %v529_v51 = vmax.f32 %v283_v47, 0.0 }
  0xd2   :  { %v1179_v52 = vpop.f32.mrf.mxu0 }
  0xd3   :  { %v527_v54 = vmax.f32 %v275_v50, 0.0  ;;  %v591_v58 = vpack.c.bf16 %v529_v51, %v528_v55  ;;  %v296_v62 = vadd.f32 %v1179_v52, %v1630_v44 }
  0xd4   :  { %v287_v56 = vpop.f32.mrf.mxu0 }
  0xd5   :  { %v590_v57 = vpack.c.bf16 %v527_v54, %v526_v53  ;;  %v288_v60 = vadd.f32 %v1630_v44, %v287_v56  ;;  %v532_v5 = vmax.f32 %v296_v62, 0.0 }
  0xd6   :  { %v1180_v59 = vpop.f32.mrf.mxu0 }
  0xd7   :  { %v299_v61 = vadd.f32 %v1180_v59, %v1630_v44  ;;  %1253 = vmatprep.mubr.bf16.mxu0 %v590_v57  ;;  %v530_v3 = vmax.f32 %v288_v60, 0.0 }
  0xd8   :  { %v290_v63 = vpop.f32.mrf.mxu0  ;;  %1254 = vmatmul.mubr.bf16.vlgmr.msra.gmra.mxu0 %v591_v58 }
  0xd9   :  { %v291_v0 = vadd.f32 %v1630_v44, %v290_v63  ;;  %v533_v1 = vmax.f32 %v299_v61, 0.0 }
  0xda   :  { %v1183_v2 = vpop.f32.mrf.mxu0 }
  0xdb   :  { %v531_v4 = vmax.f32 %v291_v0, 0.0  ;;  %v593_v8 = vpack.c.bf16 %v533_v1, %v532_v5  ;;  %v312_v12 = vadd.f32 %v1183_v2, %v1630_v44 }
  0xdc   :  { %v303_v6 = vpop.f32.mrf.mxu0 }
  0xdd   :  { %v592_v7 = vpack.c.bf16 %v531_v4, %v530_v3  ;;  %v304_v10 = vadd.f32 %v1630_v44, %v303_v6  ;;  %v536_v19 = vmax.f32 %v312_v12, 0.0 }
  0xde   :  { %v1184_v9 = vpop.f32.mrf.mxu0 }
  0xdf   :  { %v315_v11 = vadd.f32 %v1184_v9, %v1630_v44  ;;  %1257 = vmatprep.mubr.bf16.mxu1 %v592_v7  ;;  %v534_v17 = vmax.f32 %v304_v10, 0.0 }
  0xe0   :  { %v306_v13 = vpop.f32.mrf.mxu0  ;;  %1258 = vmatmul.mubr.bf16.vlgmr.msra.gmra.mxu1 %v593_v8 }
  0xe1   :  { %v307_v14 = vadd.f32 %v1630_v44, %v306_v13  ;;  %v537_v15 = vmax.f32 %v315_v11, 0.0 }
  0xe2   :  { %v1187_v16 = vpop.f32.mrf.mxu0 }
  0xe3   :  { %v535_v18 = vmax.f32 %v307_v14, 0.0  ;;  %v595_v22 = vpack.c.bf16 %v537_v15, %v536_v19  ;;  %v328_v26 = vadd.f32 %v1187_v16, %v1630_v44 }
  0xe4   :  { %v319_v20 = vpop.f32.mrf.mxu0 }
  0xe5   :  { %v594_v21 = vpack.c.bf16 %v535_v18, %v534_v17  ;;  %v320_v24 = vadd.f32 %v1630_v44, %v319_v20  ;;  %v540_v33 = vmax.f32 %v328_v26, 0.0 }
  0xe6   :  { %v1188_v23 = vpop.f32.mrf.mxu0 }
  0xe7   :  { %v331_v25 = vadd.f32 %v1188_v23, %v1630_v44  ;;  %1261 = vmatprep.mubr.bf16.mxu1 %v594_v21  ;;  %v538_v31 = vmax.f32 %v320_v24, 0.0 }
  0xe8   :  { %v322_v27 = vpop.f32.mrf.mxu0  ;;  %1262 = vmatmul.mubr.bf16.gmra.mxu1 %v595_v22 }
  0xe9   :  { %v323_v28 = vadd.f32 %v1630_v44, %v322_v27  ;;  %v541_v29 = vmax.f32 %v331_v25, 0.0 }
  0xea   :  { %v1191_v30 = vpop.f32.mrf.mxu0 }
  0xeb   :  { %v539_v32 = vmax.f32 %v323_v28, 0.0  ;;  %v597_v36 = vpack.c.bf16 %v541_v29, %v540_v33  ;;  %v344_v40 = vadd.f32 %v1191_v30, %v1630_v44 }
  0xec   :  { %v335_v34 = vpop.f32.mrf.mxu0 }
  0xed   :  { %v596_v35 = vpack.c.bf16 %v539_v32, %v538_v31  ;;  %v336_v38 = vadd.f32 %v1630_v44, %v335_v34  ;;  %v544_v48 = vmax.f32 %v344_v40, 0.0 }
  0xee   :  { %v1192_v37 = vpop.f32.mrf.mxu0 }
  0xef   :  { %v347_v39 = vadd.f32 %v1192_v37, %v1630_v44  ;;  %1265 = vmatprep.mubr.bf16.mxu1 %v596_v35  ;;  %v542_v46 = vmax.f32 %v336_v38, 0.0 }
  0xf0   :  { %v338_v41 = vpop.f32.mrf.mxu0  ;;  %1266 = vmatmul.mubr.bf16.gmra.mxu1 %v597_v36 }
  0xf1   :  { %v339_v42 = vadd.f32 %v1630_v44, %v338_v41  ;;  %v545_v43 = vmax.f32 %v347_v39, 0.0 }
  0xf2   :  { %v1195_v45 = vpop.f32.mrf.mxu0 }
  0xf3   :  { %v543_v47 = vmax.f32 %v339_v42, 0.0  ;;  %v599_v51 = vpack.c.bf16 %v545_v43, %v544_v48  ;;  %v360_v55 = vadd.f32 %v1195_v45, %v1630_v44 }
  0xf4   :  { %v351_v49 = vpop.f32.mrf.mxu0 }
  0xf5   :  { %v598_v50 = vpack.c.bf16 %v543_v47, %v542_v46  ;;  %v352_v53 = vadd.f32 %v1630_v44, %v351_v49  ;;  %v548_v62 = vmax.f32 %v360_v55, 0.0 }
  0xf6   :  { %v1196_v52 = vpop.f32.mrf.mxu0 }
  0xf7   :  { %v363_v54 = vadd.f32 %v1196_v52, %v1630_v44  ;;  %1269 = vmatprep.mubr.bf16.mxu1 %v598_v50  ;;  %v546_v60 = vmax.f32 %v352_v53, 0.0 }
  0xf8   :  { %v354_v56 = vpop.f32.mrf.mxu0  ;;  %1270 = vmatmul.mubr.bf16.gmra.mxu1 %v599_v51 }
  0xf9   :  { %v355_v57 = vadd.f32 %v1630_v44, %v354_v56  ;;  %v549_v58 = vmax.f32 %v363_v54, 0.0 }
  0xfa   :  { %v1199_v59 = vpop.f32.mrf.mxu0 }
  0xfb   :  { %v547_v61 = vmax.f32 %v355_v57, 0.0  ;;  %v601_v1 = vpack.c.bf16 %v549_v58, %v548_v62  ;;  %v376_v5 = vadd.f32 %v1199_v59, %v1630_v44 }
  0xfc   :  { %v367_v63 = vpop.f32.mrf.mxu0 }
  0xfd   :  { %v600_v0 = vpack.c.bf16 %v547_v61, %v546_v60  ;;  %v368_v3 = vadd.f32 %v1630_v44, %v367_v63  ;;  %v552_v12 = vmax.f32 %v376_v5, 0.0 }
  0xfe   :  { %v1200_v2 = vpop.f32.mrf.mxu0 }
  0xff   :  { %v379_v4 = vadd.f32 %v1200_v2, %v1630_v44  ;;  %1273 = vmatprep.mubr.bf16.mxu1 %v600_v0  ;;  %v550_v10 = vmax.f32 %v368_v3, 0.0 }
 0x100   :  { %v370_v6 = vpop.f32.mrf.mxu0  ;;  %1274 = vmatmul.mubr.bf16.gmra.mxu1 %v601_v1 }
 0x101   :  { %v371_v7 = vadd.f32 %v1630_v44, %v370_v6  ;;  %v553_v8 = vmax.f32 %v379_v4, 0.0 }
 0x102   :  { %v1203_v9 = vpop.f32.mrf.mxu0 }
 0x103   :  { %v551_v11 = vmax.f32 %v371_v7, 0.0  ;;  %v603_v15 = vpack.c.bf16 %v553_v8, %v552_v12  ;;  %v392_v19 = vadd.f32 %v1203_v9, %v1630_v44 }
 0x104   :  { %v383_v13 = vpop.f32.mrf.mxu0 }
 0x105   :  { %v602_v14 = vpack.c.bf16 %v551_v11, %v550_v10  ;;  %v384_v17 = vadd.f32 %v1630_v44, %v383_v13  ;;  %v556_v26 = vmax.f32 %v392_v19, 0.0 }
 0x106   :  { %v1204_v16 = vpop.f32.mrf.mxu0 }
 0x107   :  { %v395_v18 = vadd.f32 %v1204_v16, %v1630_v44  ;;  %1277 = vmatprep.mubr.bf16.mxu1 %v602_v14  ;;  %v554_v24 = vmax.f32 %v384_v17, 0.0 }
 0x108   :  { %v386_v20 = vpop.f32.mrf.mxu0  ;;  %1278 = vmatmul.mubr.bf16.gmra.mxu1 %v603_v15 }
 0x109   :  { %v387_v21 = vadd.f32 %v1630_v44, %v386_v20  ;;  %v557_v22 = vmax.f32 %v395_v18, 0.0 }
 0x10a   :  { %v1207_v23 = vpop.f32.mrf.mxu0 }
 0x10b   :  { %v555_v25 = vmax.f32 %v387_v21, 0.0  ;;  %v605_v29 = vpack.c.bf16 %v557_v22, %v556_v26  ;;  %v408_v33 = vadd.f32 %v1207_v23, %v1630_v44 }
 0x10c   :  { %v399_v27 = vpop.f32.mrf.mxu0 }
 0x10d   :  { %v604_v28 = vpack.c.bf16 %v555_v25, %v554_v24  ;;  %v400_v31 = vadd.f32 %v1630_v44, %v399_v27  ;;  %v560_v40 = vmax.f32 %v408_v33, 0.0 }
 0x10e   :  { %v1208_v30 = vpop.f32.mrf.mxu0 }
 0x10f   :  { %v411_v32 = vadd.f32 %v1208_v30, %v1630_v44  ;;  %1281 = vmatprep.mubr.bf16.mxu1 %v604_v28  ;;  %v558_v38 = vmax.f32 %v400_v31, 0.0 }
 0x110   :  { %v402_v34 = vpop.f32.mrf.mxu0  ;;  %1282 = vmatmul.mubr.bf16.gmra.mxu1 %v605_v29 }
 0x111   :  { %v403_v35 = vadd.f32 %v1630_v44, %v402_v34  ;;  %v561_v36 = vmax.f32 %v411_v32, 0.0 }
 0x112   :  { %v1211_v37 = vpop.f32.mrf.mxu0 }
 0x113   :  { %v559_v39 = vmax.f32 %v403_v35, 0.0  ;;  %v607_v43 = vpack.c.bf16 %v561_v36, %v560_v40  ;;  %v424_v48 = vadd.f32 %v1211_v37, %v1630_v44 }
 0x114   :  { %v415_v41 = vpop.f32.mrf.mxu0 }
 0x115   :  { %v606_v42 = vpack.c.bf16 %v559_v39, %v558_v38  ;;  %v416_v46 = vadd.f32 %v1630_v44, %v415_v41  ;;  %v564_v55 = vmax.f32 %v424_v48, 0.0 }
 0x116   :  { %v1212_v45 = vpop.f32.mrf.mxu0 }
 0x117   :  { %v427_v47 = vadd.f32 %v1212_v45, %v1630_v44  ;;  %1285 = vmatprep.mubr.bf16.mxu1 %v606_v42  ;;  %v562_v53 = vmax.f32 %v416_v46, 0.0 }
 0x118   :  { %v418_v49 = vpop.f32.mrf.mxu0  ;;  %1286 = vmatmul.mubr.bf16.gmra.mxu1 %v607_v43 }
 0x119   :  { %v419_v50 = vadd.f32 %v1630_v44, %v418_v49  ;;  %v565_v51 = vmax.f32 %v427_v47, 0.0 }
 0x11a   :  { %v1215_v52 = vpop.f32.mrf.mxu0 }
 0x11b   :  { %v563_v54 = vmax.f32 %v419_v50, 0.0  ;;  %v609_v58 = vpack.c.bf16 %v565_v51, %v564_v55  ;;  %v440_v62 = vadd.f32 %v1215_v52, %v1630_v44 }
 0x11c   :  { %v431_v56 = vpop.f32.mrf.mxu0 }
 0x11d   :  { %v608_v57 = vpack.c.bf16 %v563_v54, %v562_v53  ;;  %v432_v60 = vadd.f32 %v1630_v44, %v431_v56  ;;  %v568_v5 = vmax.f32 %v440_v62, 0.0 }
 0x11e   :  { %v1216_v59 = vpop.f32.mrf.mxu0 }
 0x11f   :  { %v443_v61 = vadd.f32 %v1216_v59, %v1630_v44  ;;  %1289 = vmatprep.mubr.bf16.mxu1 %v608_v57  ;;  %v566_v3 = vmax.f32 %v432_v60, 0.0 }
 0x120   :  { %v434_v63 = vpop.f32.mrf.mxu0  ;;  %1290 = vmatmul.mubr.bf16.gmra.mxu1 %v609_v58 }
 0x121   :  { %v435_v0 = vadd.f32 %v1630_v44, %v434_v63  ;;  %v569_v1 = vmax.f32 %v443_v61, 0.0 }
 0x122   :  { %v1219_v2 = vpop.f32.mrf.mxu0 }
 0x123   :  { %v567_v4 = vmax.f32 %v435_v0, 0.0  ;;  %v611_v8 = vpack.c.bf16 %v569_v1, %v568_v5  ;;  %v456_v12 = vadd.f32 %v1219_v2, %v1630_v44 }
 0x124   :  { %v447_v6 = vpop.f32.mrf.mxu0 }
 0x125   :  { %v610_v7 = vpack.c.bf16 %v567_v4, %v566_v3  ;;  %v448_v10 = vadd.f32 %v1630_v44, %v447_v6  ;;  %v572_v19 = vmax.f32 %v456_v12, 0.0 }
 0x126   :  { %v1220_v9 = vpop.f32.mrf.mxu0 }
 0x127   :  { %v459_v11 = vadd.f32 %v1220_v9, %v1630_v44  ;;  %1293 = vmatprep.mubr.bf16.mxu1 %v610_v7  ;;  %v570_v17 = vmax.f32 %v448_v10, 0.0 }
 0x128   :  { %v450_v13 = vpop.f32.mrf.mxu0  ;;  %1294 = vmatmul.mubr.bf16.gmra.mxu1 %v611_v8 }
 0x129   :  { %v451_v14 = vadd.f32 %v1630_v44, %v450_v13  ;;  %v573_v15 = vmax.f32 %v459_v11, 0.0 }
 0x12a   :  { %v1223_v16 = vpop.f32.mrf.mxu0 }
 0x12b   :  { %v571_v18 = vmax.f32 %v451_v14, 0.0  ;;  %v613_v22 = vpack.c.bf16 %v573_v15, %v572_v19  ;;  %v472_v26 = vadd.f32 %v1223_v16, %v1630_v44  ;;  %v1699_v14 = vld [vmem:[%s2025_s4] ss:$0 sm:$0xff] }
 0x12c   :  { %v463_v20 = vpop.f32.mrf.mxu0 }
 0x12d   :  { %v612_v21 = vpack.c.bf16 %v571_v18, %v570_v17  ;;  %v464_v24 = vadd.f32 %v1630_v44, %v463_v20  ;;  %v576_v33 = vmax.f32 %v472_v26, 0.0 }
 0x12e   :  { %v1224_v23 = vpop.f32.mrf.mxu0 }
 0x12f   :  { %v475_v25 = vadd.f32 %v1224_v23, %v1630_v44  ;;  %1297 = vmatprep.mubr.bf16.mxu1 %v612_v21  ;;  %v574_v31 = vmax.f32 %v464_v24, 0.0 }
 0x130   :  { %v466_v27 = vpop.f32.mrf.mxu0  ;;  %1298 = vmatmul.mubr.bf16.gmra.mxu1 %v613_v22 }
 0x131   :  { %v467_v28 = vadd.f32 %v1630_v44, %v466_v27  ;;  %v577_v29 = vmax.f32 %v475_v25, 0.0 }
 0x132   :  { %v1227_v30 = vpop.f32.mrf.mxu0 }
 0x133   :  { %v575_v32 = vmax.f32 %v467_v28, 0.0  ;;  %v615_v36 = vpack.c.bf16 %v577_v29, %v576_v33  ;;  %v488_v40 = vadd.f32 %v1227_v30, %v1630_v44 }
 0x134   :  { %v479_v34 = vpop.f32.mrf.mxu0 }
 0x135   :  { %v614_v35 = vpack.c.bf16 %v575_v32, %v574_v31  ;;  %v480_v38 = vadd.f32 %v1630_v44, %v479_v34  ;;  %v580_v48 = vmax.f32 %v488_v40, 0.0 }
 0x136   :  { %v1228_v37 = vpop.f32.mrf.mxu0 }
 0x137   :  { %v491_v39 = vadd.f32 %v1228_v37, %v1630_v44  ;;  %1301 = vmatprep.mubr.bf16.mxu1 %v614_v35  ;;  %v578_v46 = vmax.f32 %v480_v38, 0.0 }
 0x138   :  { %v482_v41 = vpop.f32.mrf.mxu0  ;;  %1302 = vmatmul.mubr.bf16.gmra.mxu1 %v615_v36 }
 0x139   :  { %v483_v42 = vadd.f32 %v1630_v44, %v482_v41  ;;  %v581_v43 = vmax.f32 %v491_v39, 0.0 }
 0x13a   :  { %v1231_v45 = vpop.f32.mrf.mxu0 }
 0x13b   :  { %v579_v47 = vmax.f32 %v483_v42, 0.0  ;;  %v617_v51 = vpack.c.bf16 %v581_v43, %v580_v48  ;;  %v504_v55 = vadd.f32 %v1231_v45, %v1630_v44 }
 0x13c   :  { %v495_v49 = vpop.f32.mrf.mxu0 }
 0x13d   :  { %v616_v50 = vpack.c.bf16 %v579_v47, %v578_v46  ;;  %v496_v53 = vadd.f32 %v1630_v44, %v495_v49  ;;  %v584_v62 = vmax.f32 %v504_v55, 0.0 }
 0x13e   :  { %v1232_v52 = vpop.f32.mrf.mxu0 }
 0x13f   :  { %v507_v54 = vadd.f32 %v1232_v52, %v1630_v44  ;;  %1305 = vmatprep.mubr.bf16.mxu1 %v616_v50  ;;  %v582_v60 = vmax.f32 %v496_v53, 0.0 }
 0x140   :  { %v498_v56 = vpop.f32.mrf.mxu0  ;;  %1306 = vmatmul.mubr.bf16.gmra.mxu1 %v617_v51 }
 0x141   :  { %v499_v57 = vadd.f32 %v1630_v44, %v498_v56  ;;  %v585_v58 = vmax.f32 %v507_v54, 0.0 }
 0x142   :  { %v1235_v59 = vpop.f32.mrf.mxu0 }
 0x143   :  { %v583_v61 = vmax.f32 %v499_v57, 0.0  ;;  %v619_v1 = vpack.c.bf16 %v585_v58, %v584_v62  ;;  %v520_v5 = vadd.f32 %v1235_v59, %v1630_v44 }
 0x144   :  { %v511_v63 = vpop.f32.mrf.mxu0 }
 0x145   :  { %v618_v0 = vpack.c.bf16 %v583_v61, %v582_v60  ;;  %v512_v3 = vadd.f32 %v1630_v44, %v511_v63  ;;  %v588_v11 = vmax.f32 %v520_v5, 0.0 }
 0x146   :  { %v1236_v2 = vpop.f32.mrf.mxu0 }
 0x147   :  { %v523_v4 = vadd.f32 %v1236_v2, %v1630_v44  ;;  %1309 = vmatprep.mubr.bf16.mxu1 %v618_v0  ;;  %v586_v9 = vmax.f32 %v512_v3, 0.0 }
 0x148   :  { %v514_v6 = vpop.f32.mrf.mxu0  ;;  %1310 = vmatmul.mubr.bf16.gmra.mxu1 %v619_v1 }
 0x149   :  { %v515_v7 = vadd.f32 %v1630_v44, %v514_v6  ;;  %v589_v8 = vmax.f32 %v523_v4, 0.0 }
 0x14b   :  { %v587_v10 = vmax.f32 %v515_v7, 0.0  ;;  %v621_v13 = vpack.c.bf16 %v589_v8, %v588_v11 }
 0x14d   :  { %v620_v12 = vpack.c.bf16 %v587_v10, %v586_v9 }
 0x14f   :  { %1313 = vmatprep.mubr.bf16.mxu1 %v620_v12 }
 0x150   :  { %1314 = vmatmul.mubr.bf16.gmra.mxu1 %v621_v13 }
 0x198   :  { %v1255_v15 = vpop.f32.mrf.mxu0 }
 0x199   :  { %v736_v16 = vadd.f32 %v1255_v15, %v1699_v14 }
 0x19a   :  { %v727_v17 = vpop.f32.mrf.mxu0 }
 0x19b   :  { %985 = vst.msk [vmem:[%s2026_s5 + $0x10] sm:$0xff] %vm982_vm1, %v736_v16  ;;  %v728_v44 = vadd.f32 %v1699_v14, %v727_v17 }
 0x19c   :  { %v1256_v18 = vpop.f32.mrf.mxu0 }
 0x19d   :  { %983 = vst.msk [vmem:[%s2026_s5] sm:$0xff] %vm982_vm1, %v728_v44  ;;  %v739_v19 = vadd.f32 %v1256_v18, %v1699_v14 }
 0x19e   :  { %v730_v20 = vpop.f32.mrf.mxu0 }
 0x19f   :  { %986 = vst.msk [vmem:[%s2026_s5 + $0x18] sm:$0xff] %vm982_vm1, %v739_v19  ;;  %v731_v21 = vadd.f32 %v1699_v14, %v730_v20 }
 0x1a0   :  { %v1259_v22 = vpop.f32.mrf.mxu1 }
 0x1a1   :  { %984 = vst.msk [vmem:[%s2026_s5 + $0x8] sm:$0xff] %vm982_vm1, %v731_v21  ;;  %v752_v23 = vadd.f32 %v1259_v22, %v1699_v14 }
 0x1a2   :  { %v743_v24 = vpop.f32.mrf.mxu1 }
 0x1a3   :  { %989 = vst.msk [vmem:[%s2026_s5 + $0x30] sm:$0xff] %vm982_vm1, %v752_v23  ;;  %v744_v25 = vadd.f32 %v1699_v14, %v743_v24 }
 0x1a4   :  { %v1260_v26 = vpop.f32.mrf.mxu1 }
 0x1a5   :  { %987 = vst.msk [vmem:[%s2026_s5 + $0x20] sm:$0xff] %vm982_vm1, %v744_v25  ;;  %v755_v27 = vadd.f32 %v1260_v26, %v1699_v14 }
 0x1a6   :  { %v746_v28 = vpop.f32.mrf.mxu1 }
 0x1a7   :  { %990 = vst.msk [vmem:[%s2026_s5 + $0x38] sm:$0xff] %vm982_vm1, %v755_v27  ;;  %v747_v29 = vadd.f32 %v1699_v14, %v746_v28 }
 0x1a8   :  { %v1263_v30 = vpop.f32.mrf.mxu1 }
 0x1a9   :  { %988 = vst.msk [vmem:[%s2026_s5 + $0x28] sm:$0xff] %vm982_vm1, %v747_v29  ;;  %v768_v31 = vadd.f32 %v1263_v30, %v1699_v14 }
 0x1aa   :  { %v759_v32 = vpop.f32.mrf.mxu1 }
 0x1ab   :  { %993 = vst.msk [vmem:[%s2026_s5 + $0x50] sm:$0xff] %vm982_vm1, %v768_v31  ;;  %v760_v33 = vadd.f32 %v1699_v14, %v759_v32 }
 0x1ac   :  { %v1264_v34 = vpop.f32.mrf.mxu1 }
 0x1ad   :  { %991 = vst.msk [vmem:[%s2026_s5 + $0x40] sm:$0xff] %vm982_vm1, %v760_v33  ;;  %v771_v35 = vadd.f32 %v1264_v34, %v1699_v14 }
 0x1ae   :  { %v762_v36 = vpop.f32.mrf.mxu1 }
 0x1af   :  { %994 = vst.msk [vmem:[%s2026_s5 + $0x58] sm:$0xff] %vm982_vm1, %v771_v35  ;;  %v763_v37 = vadd.f32 %v1699_v14, %v762_v36 }
 0x1b0   :  { %v1267_v38 = vpop.f32.mrf.mxu1 }
 0x1b1   :  { %992 = vst.msk [vmem:[%s2026_s5 + $0x48] sm:$0xff] %vm982_vm1, %v763_v37  ;;  %v784_v39 = vadd.f32 %v1267_v38, %v1699_v14 }
 0x1b2   :  { %v775_v40 = vpop.f32.mrf.mxu1 }
 0x1b3   :  { %997 = vst.msk [vmem:[%s2026_s5 + $0x70] sm:$0xff] %vm982_vm1, %v784_v39  ;;  %v776_v41 = vadd.f32 %v1699_v14, %v775_v40 }
 0x1b4   :  { %v1268_v42 = vpop.f32.mrf.mxu1 }
 0x1b5   :  { %995 = vst.msk [vmem:[%s2026_s5 + $0x60] sm:$0xff] %vm982_vm1, %v776_v41  ;;  %v787_v43 = vadd.f32 %v1268_v42, %v1699_v14 }
 0x1b6   :  { %v778_v45 = vpop.f32.mrf.mxu1 }
 0x1b7   :  { %998 = vst.msk [vmem:[%s2026_s5 + $0x78] sm:$0xff] %vm982_vm1, %v787_v43  ;;  %v779_v46 = vadd.f32 %v1699_v14, %v778_v45 }
 0x1b8   :  { %v1271_v47 = vpop.f32.mrf.mxu1 }
 0x1b9   :  { %996 = vst.msk [vmem:[%s2026_s5 + $0x68] sm:$0xff] %vm982_vm1, %v779_v46  ;;  %v800_v48 = vadd.f32 %v1271_v47, %v1699_v14 }
 0x1ba   :  { %v791_v49 = vpop.f32.mrf.mxu1 }
 0x1bb   :  { %1001 = vst.msk [vmem:[%s2026_s5 + $0x90] sm:$0xff] %vm982_vm1, %v800_v48  ;;  %v792_v50 = vadd.f32 %v1699_v14, %v791_v49 }
 0x1bc   :  { %v1272_v51 = vpop.f32.mrf.mxu1 }
 0x1bd   :  { %999 = vst.msk [vmem:[%s2026_s5 + $0x80] sm:$0xff] %vm982_vm1, %v792_v50  ;;  %v803_v52 = vadd.f32 %v1272_v51, %v1699_v14 }
 0x1be   :  { %v794_v53 = vpop.f32.mrf.mxu1 }
 0x1bf   :  { %1002 = vst.msk [vmem:[%s2026_s5 + $0x98] sm:$0xff] %vm982_vm1, %v803_v52  ;;  %v795_v54 = vadd.f32 %v1699_v14, %v794_v53 }
 0x1c0   :  { %v1275_v55 = vpop.f32.mrf.mxu1 }
 0x1c1   :  { %1000 = vst.msk [vmem:[%s2026_s5 + $0x88] sm:$0xff] %vm982_vm1, %v795_v54  ;;  %v816_v56 = vadd.f32 %v1275_v55, %v1699_v14 }
 0x1c2   :  { %v807_v57 = vpop.f32.mrf.mxu1 }
 0x1c3   :  { %1005 = vst.msk [vmem:[%s2026_s5 + $0xb0] sm:$0xff] %vm982_vm1, %v816_v56  ;;  %v808_v58 = vadd.f32 %v1699_v14, %v807_v57 }
 0x1c4   :  { %v1276_v59 = vpop.f32.mrf.mxu1 }
 0x1c5   :  { %1003 = vst.msk [vmem:[%s2026_s5 + $0xa0] sm:$0xff] %vm982_vm1, %v808_v58  ;;  %v819_v60 = vadd.f32 %v1276_v59, %v1699_v14 }
 0x1c6   :  { %v810_v61 = vpop.f32.mrf.mxu1 }
 0x1c7   :  { %1006 = vst.msk [vmem:[%s2026_s5 + $0xb8] sm:$0xff] %vm982_vm1, %v819_v60  ;;  %v811_v62 = vadd.f32 %v1699_v14, %v810_v61 }
 0x1c8   :  { %v1279_v63 = vpop.f32.mrf.mxu1 }
 0x1c9   :  { %1004 = vst.msk [vmem:[%s2026_s5 + $0xa8] sm:$0xff] %vm982_vm1, %v811_v62  ;;  %v832_v0 = vadd.f32 %v1279_v63, %v1699_v14 }
 0x1ca   :  { %v823_v1 = vpop.f32.mrf.mxu1 }
 0x1cb   :  { %1009 = vst.msk [vmem:[%s2026_s5 + $0xd0] sm:$0xff] %vm982_vm1, %v832_v0  ;;  %v824_v2 = vadd.f32 %v1699_v14, %v823_v1 }
 0x1cc   :  { %v1280_v3 = vpop.f32.mrf.mxu1 }
 0x1cd   :  { %1007 = vst.msk [vmem:[%s2026_s5 + $0xc0] sm:$0xff] %vm982_vm1, %v824_v2  ;;  %v835_v4 = vadd.f32 %v1280_v3, %v1699_v14 }
 0x1ce   :  { %v826_v5 = vpop.f32.mrf.mxu1 }
 0x1cf   :  { %1010 = vst.msk [vmem:[%s2026_s5 + $0xd8] sm:$0xff] %vm982_vm1, %v835_v4  ;;  %v827_v6 = vadd.f32 %v1699_v14, %v826_v5 }
 0x1d0   :  { %v1283_v7 = vpop.f32.mrf.mxu1 }
 0x1d1   :  { %1008 = vst.msk [vmem:[%s2026_s5 + $0xc8] sm:$0xff] %vm982_vm1, %v827_v6  ;;  %v848_v8 = vadd.f32 %v1283_v7, %v1699_v14 }
 0x1d2   :  { %v839_v9 = vpop.f32.mrf.mxu1 }
 0x1d3   :  { %1013 = vst.msk [vmem:[%s2026_s5 + $0xf0] sm:$0xff] %vm982_vm1, %v848_v8  ;;  %v840_v10 = vadd.f32 %v1699_v14, %v839_v9 }
 0x1d4   :  { %v1284_v11 = vpop.f32.mrf.mxu1 }
 0x1d5   :  { %1011 = vst.msk [vmem:[%s2026_s5 + $0xe0] sm:$0xff] %vm982_vm1, %v840_v10  ;;  %v851_v12 = vadd.f32 %v1284_v11, %v1699_v14 }
 0x1d6   :  { %v842_v13 = vpop.f32.mrf.mxu1 }
 0x1d7   :  { %1014 = vst.msk [vmem:[%s2026_s5 + $0xf8] sm:$0xff] %vm982_vm1, %v851_v12  ;;  %v843_v15 = vadd.f32 %v1699_v14, %v842_v13 }
 0x1d8   :  { %v1287_v16 = vpop.f32.mrf.mxu1 }
 0x1d9   :  { %1012 = vst.msk [vmem:[%s2026_s5 + $0xe8] sm:$0xff] %vm982_vm1, %v843_v15  ;;  %v864_v17 = vadd.f32 %v1287_v16, %v1699_v14 }
 0x1da   :  { %v855_v44 = vpop.f32.mrf.mxu1 }
 0x1db   :  { %1017 = vst.msk [vmem:[%s2026_s5 + $0x110] sm:$0xff] %vm982_vm1, %v864_v17  ;;  %v856_v18 = vadd.f32 %v1699_v14, %v855_v44 }
 0x1dc   :  { %v1288_v19 = vpop.f32.mrf.mxu1 }
 0x1dd   :  { %1015 = vst.msk [vmem:[%s2026_s5 + $0x100] sm:$0xff] %vm982_vm1, %v856_v18  ;;  %v867_v20 = vadd.f32 %v1288_v19, %v1699_v14 }
 0x1de   :  { %v858_v21 = vpop.f32.mrf.mxu1 }
 0x1df   :  { %1018 = vst.msk [vmem:[%s2026_s5 + $0x118] sm:$0xff] %vm982_vm1, %v867_v20  ;;  %v859_v22 = vadd.f32 %v1699_v14, %v858_v21 }
 0x1e0   :  { %v1291_v23 = vpop.f32.mrf.mxu1 }
 0x1e1   :  { %1016 = vst.msk [vmem:[%s2026_s5 + $0x108] sm:$0xff] %vm982_vm1, %v859_v22  ;;  %v880_v24 = vadd.f32 %v1291_v23, %v1699_v14 }
 0x1e2   :  { %v871_v25 = vpop.f32.mrf.mxu1 }
 0x1e3   :  { %1021 = vst.msk [vmem:[%s2026_s5 + $0x130] sm:$0xff] %vm982_vm1, %v880_v24  ;;  %v872_v26 = vadd.f32 %v1699_v14, %v871_v25 }
 0x1e4   :  { %v1292_v27 = vpop.f32.mrf.mxu1 }
 0x1e5   :  { %1019 = vst.msk [vmem:[%s2026_s5 + $0x120] sm:$0xff] %vm982_vm1, %v872_v26  ;;  %v883_v28 = vadd.f32 %v1292_v27, %v1699_v14 }
 0x1e6   :  { %v874_v29 = vpop.f32.mrf.mxu1 }
 0x1e7   :  { %1022 = vst.msk [vmem:[%s2026_s5 + $0x138] sm:$0xff] %vm982_vm1, %v883_v28  ;;  %v875_v30 = vadd.f32 %v1699_v14, %v874_v29 }
 0x1e8   :  { %v1295_v31 = vpop.f32.mrf.mxu1 }
 0x1e9   :  { %1020 = vst.msk [vmem:[%s2026_s5 + $0x128] sm:$0xff] %vm982_vm1, %v875_v30  ;;  %v896_v32 = vadd.f32 %v1295_v31, %v1699_v14 }
 0x1ea   :  { %v887_v33 = vpop.f32.mrf.mxu1 }
 0x1eb   :  { %1025 = vst.msk [vmem:[%s2026_s5 + $0x150] sm:$0xff] %vm982_vm1, %v896_v32  ;;  %v888_v34 = vadd.f32 %v1699_v14, %v887_v33 }
 0x1ec   :  { %v1296_v35 = vpop.f32.mrf.mxu1 }
 0x1ed   :  { %1023 = vst.msk [vmem:[%s2026_s5 + $0x140] sm:$0xff] %vm982_vm1, %v888_v34  ;;  %v899_v36 = vadd.f32 %v1296_v35, %v1699_v14 }
 0x1ee   :  { %v890_v37 = vpop.f32.mrf.mxu1 }
 0x1ef   :  { %1026 = vst.msk [vmem:[%s2026_s5 + $0x158] sm:$0xff] %vm982_vm1, %v899_v36  ;;  %v891_v38 = vadd.f32 %v1699_v14, %v890_v37 }
 0x1f0   :  { %v1299_v39 = vpop.f32.mrf.mxu1 }
 0x1f1   :  { %1024 = vst.msk [vmem:[%s2026_s5 + $0x148] sm:$0xff] %vm982_vm1, %v891_v38  ;;  %v912_v40 = vadd.f32 %v1299_v39, %v1699_v14 }
 0x1f2   :  { %v903_v41 = vpop.f32.mrf.mxu1 }
 0x1f3   :  { %1029 = vst.msk [vmem:[%s2026_s5 + $0x170] sm:$0xff] %vm982_vm1, %v912_v40  ;;  %v904_v42 = vadd.f32 %v1699_v14, %v903_v41 }
 0x1f4   :  { %v1300_v43 = vpop.f32.mrf.mxu1 }
 0x1f5   :  { %1027 = vst.msk [vmem:[%s2026_s5 + $0x160] sm:$0xff] %vm982_vm1, %v904_v42  ;;  %v915_v45 = vadd.f32 %v1300_v43, %v1699_v14 }
 0x1f6   :  { %v906_v46 = vpop.f32.mrf.mxu1 }
 0x1f7   :  { %1030 = vst.msk [vmem:[%s2026_s5 + $0x178] sm:$0xff] %vm982_vm1, %v915_v45  ;;  %v907_v47 = vadd.f32 %v1699_v14, %v906_v46 }
 0x1f8   :  { %v1303_v48 = vpop.f32.mrf.mxu1 }
 0x1f9   :  { %1028 = vst.msk [vmem:[%s2026_s5 + $0x168] sm:$0xff] %vm982_vm1, %v907_v47  ;;  %v928_v49 = vadd.f32 %v1303_v48, %v1699_v14 }
 0x1fa   :  { %v919_v50 = vpop.f32.mrf.mxu1 }
 0x1fb   :  { %1033 = vst.msk [vmem:[%s2026_s5 + $0x190] sm:$0xff] %vm982_vm1, %v928_v49  ;;  %v920_v51 = vadd.f32 %v1699_v14, %v919_v50 }
 0x1fc   :  { %v1304_v52 = vpop.f32.mrf.mxu1 }
 0x1fd   :  { %1031 = vst.msk [vmem:[%s2026_s5 + $0x180] sm:$0xff] %vm982_vm1, %v920_v51  ;;  %v931_v53 = vadd.f32 %v1304_v52, %v1699_v14 }
 0x1fe   :  { %v922_v54 = vpop.f32.mrf.mxu1 }
 0x1ff   :  { %1034 = vst.msk [vmem:[%s2026_s5 + $0x198] sm:$0xff] %vm982_vm1, %v931_v53  ;;  %v923_v55 = vadd.f32 %v1699_v14, %v922_v54 }
 0x200   :  { %v1307_v56 = vpop.f32.mrf.mxu1 }
 0x201   :  { %1032 = vst.msk [vmem:[%s2026_s5 + $0x188] sm:$0xff] %vm982_vm1, %v923_v55  ;;  %v944_v57 = vadd.f32 %v1307_v56, %v1699_v14 }
 0x202   :  { %v935_v58 = vpop.f32.mrf.mxu1 }
 0x203   :  { %1037 = vst.msk [vmem:[%s2026_s5 + $0x1b0] sm:$0xff] %vm982_vm1, %v944_v57  ;;  %v936_v59 = vadd.f32 %v1699_v14, %v935_v58 }
 0x204   :  { %v1308_v60 = vpop.f32.mrf.mxu1 }
 0x205   :  { %1035 = vst.msk [vmem:[%s2026_s5 + $0x1a0] sm:$0xff] %vm982_vm1, %v936_v59  ;;  %v947_v61 = vadd.f32 %v1308_v60, %v1699_v14 }
 0x206   :  { %v938_v62 = vpop.f32.mrf.mxu1 }
 0x207   :  { %1038 = vst.msk [vmem:[%s2026_s5 + $0x1b8] sm:$0xff] %vm982_vm1, %v947_v61  ;;  %v939_v63 = vadd.f32 %v1699_v14, %v938_v62 }
 0x208   :  { %v1311_v0 = vpop.f32.mrf.mxu1 }
 0x209   :  { %1036 = vst.msk [vmem:[%s2026_s5 + $0x1a8] sm:$0xff] %vm982_vm1, %v939_v63  ;;  %v960_v1 = vadd.f32 %v1311_v0, %v1699_v14 }
 0x20a   :  { %v951_v2 = vpop.f32.mrf.mxu1 }
 0x20b   :  { %1041 = vst.msk [vmem:[%s2026_s5 + $0x1d0] sm:$0xff] %vm982_vm1, %v960_v1  ;;  %v952_v3 = vadd.f32 %v1699_v14, %v951_v2 }
 0x20c   :  { %v1312_v4 = vpop.f32.mrf.mxu1 }
 0x20d   :  { %1039 = vst.msk [vmem:[%s2026_s5 + $0x1c0] sm:$0xff] %vm982_vm1, %v952_v3  ;;  %v963_v5 = vadd.f32 %v1312_v4, %v1699_v14 }
 0x20e   :  { %v954_v6 = vpop.f32.mrf.mxu1 }
 0x20f   :  { %1042 = vst.msk [vmem:[%s2026_s5 + $0x1d8] sm:$0xff] %vm982_vm1, %v963_v5  ;;  %v955_v7 = vadd.f32 %v1699_v14, %v954_v6 }
 0x210   :  { %v1315_v8 = vpop.f32.mrf.mxu1 }
 0x211   :  { %1040 = vst.msk [vmem:[%s2026_s5 + $0x1c8] sm:$0xff] %vm982_vm1, %v955_v7  ;;  %v976_v9 = vadd.f32 %v1315_v8, %v1699_v14 }
 0x212   :  { %v967_v10 = vpop.f32.mrf.mxu1 }
 0x213   :  { %1045 = vst.msk [vmem:[%s2026_s5 + $0x1f0] sm:$0xff] %vm982_vm1, %v976_v9  ;;  %v968_v11 = vadd.f32 %v1699_v14, %v967_v10 }
 0x214   :  { %v1316_v12 = vpop.f32.mrf.mxu1 }
 0x215   :  { %1043 = vst.msk [vmem:[%s2026_s5 + $0x1e0] sm:$0xff] %vm982_vm1, %v968_v11  ;;  %v979_v13 = vadd.f32 %v1316_v12, %v1699_v14 }
 0x216   :  { %v970_v15 = vpop.f32.mrf.mxu1 }
 0x217   :  { %1046 = vst.msk [vmem:[%s2026_s5 + $0x1f8] sm:$0xff] %vm982_vm1, %v979_v13  ;;  %v971_v16 = vadd.f32 %v1699_v14, %v970_v15 }
 0x219   :  { %1044 = vst.msk [vmem:[%s2026_s5 + $0x1e8] sm:$0xff] %vm982_vm1, %v971_v16 }

</bundles_post_ra>
